<compile_context>
chip_gen: v7x
topology: tpu7x:2x2x1
jax: 0.10.0
libtpu: 0.0.40
codegen_flags: <defaults>
</compile_context>

<pallas_src>
import functools

import jax
import jax.numpy as jnp
from jax.experimental import pallas as pl
from jax.experimental.pallas import tpu as pltpu


def _round_up(n, m):
    return ((n + m - 1) // m) * m


def _round_down(n, m):
    return (n // m) * m


def lr_kernel(x_ref, w_ref, b_ref, o_ref):
    # x_ref: (TM, D), w_ref: (D, 2), b_ref: (1, 2) f32, o_ref: (TM, 2) f32
    acc = jnp.dot(x_ref[...], w_ref[...], preferred_element_type=jnp.float32)
    acc = acc + b_ref[...]                      # broadcast (1, 2) over rows
    o_ref[...] = jax.nn.sigmoid(acc).astype(o_ref.dtype)


def _choose_tm(B, D, itemsize):
    """Pick a batch tile so each x DMA is multi-MiB (amortizes per-step overhead)."""
    d_pad = max(_round_up(D, 128), 128)          # last dim lane-pads to 128 in VMEM
    row_bytes = d_pad * itemsize
    target_tile_bytes = 4 * 1024 * 1024          # ~4 MiB tile -> 8 MiB double-buffered
    max_tile_bytes = 12 * 1024 * 1024            # 2 buffers <= 24 MiB: fits v7x scoped VMEM

    tm = max(target_tile_bytes // row_bytes, 1024)
    tm = _round_up(tm, 8)
    tm = min(tm, max(_round_down(max_tile_bytes // row_bytes, 8), 8))

    if B <= tm:
        if B >= 2048:
            # Keep >= 2 tiles so the parallel batch axis uses both TensorCores on v7x.
            tm = _round_up(pl.cdiv(B, 2), 8)
        else:
            tm = B                               # single full-extent tile (always legal)
    return tm


@functools.partial(jax.jit, static_argnames=("tm",))
def lr_forward(x, w_t, b, *, tm=None):
    """x: (B, D), w_t: (D, 2), b: (2,) -> sigmoid(x @ w_t + b) as f32 (B, 2)."""
    B, D = x.shape
    itemsize = jnp.dtype(x.dtype).itemsize

    if tm is None:
        TM = _choose_tm(B, D, itemsize)
    else:
        TM = min(B, max(int(tm), 8))
        if TM < B:
            TM = _round_up(TM, 8)
    grid = (pl.cdiv(B, TM),)

    b2 = b.reshape(1, 2).astype(jnp.float32)

    # VMEM footprint estimate (lane-padded) -> scoped-VMEM limit.
    d_pad = max(_round_up(D, 128), 128)
    vmem_est = (2 * TM * d_pad * itemsize        # x double buffer
                + 2 * TM * 128 * 4               # out double buffer (2 lanes pad to 128)
                + _round_up(D, 8) * 128 * 4      # resident weight
                + 8 * 128 * 4)                   # resident bias
    vmem_limit = int(min(max(vmem_est + (8 << 20), 32 << 20), 56 << 20))

    cost = pl.CostEstimate(
        flops=4 * B * D,                         # 2 * B * 2 * D MACs
        transcendentals=2 * B,                   # sigmoid per output element
        bytes_accessed=itemsize * B * D + itemsize * D * 2 + 4 * 2 + 4 * B * 2,
    )

    return pl.pallas_call(
        lr_kernel,
        out_shape=jax.ShapeDtypeStruct((B, 2), jnp.float32),
        grid=grid,
        in_specs=[
            # Streamed batch tiles of x (double-buffered by Pallas); the ragged
            # final block (B % TM != 0) is masked by Pallas - no padding copy.
            pl.BlockSpec((TM, D), lambda i: (i, 0)),
            # Weight & bias: constant block index -> resident across all tiles.
            pl.BlockSpec((D, 2), lambda i: (0, 0)),
            pl.BlockSpec((1, 2), lambda i: (0, 0)),
        ],
        out_specs=pl.BlockSpec((TM, 2), lambda i: (i, 0)),
        compiler_params=pltpu.CompilerParams(
            dimension_semantics=("parallel",),   # batch tiles shard across TCs on v7x
            vmem_limit_bytes=vmem_limit,
        ),
        cost_estimate=cost,
    )(x, w_t, b2)


if __name__ == "__main__":
    # Small shapes consistent with the module: imageSize = 64, batch = 8.
    B, IMAGE_SIZE = 8, 64
    key = jax.random.PRNGKey(0)
    kx, kw, kb = jax.random.split(key, 3)

    x = jax.random.normal(kx, (B, IMAGE_SIZE), dtype=jnp.float32)

    # Deterministic param init matching nn.Linear(imageSize, 2):
    # weight (2, imageSize), bias (2,), uniform(-1/sqrt(fan_in), 1/sqrt(fan_in)).
    bound = 1.0 / jnp.sqrt(jnp.float32(IMAGE_SIZE))
    weight = jax.random.uniform(kw, (2, IMAGE_SIZE), jnp.float32, -bound, bound)
    bias = jax.random.uniform(kb, (2,), jnp.float32, -bound, bound)

    # Case 1: tiny batch (single full-extent tile, auto TM).
    out = lr_forward(x, weight.T, bias)
    jax.block_until_ready(out)
    ref = jax.nn.sigmoid(x @ weight.T + bias)
    assert out.shape == (B, 2)
    assert jnp.allclose(out, ref, atol=1e-5, rtol=1e-5)

    # Case 2: exercise the gridded + ragged-last-block path (B not a multiple of TM),
    # verifying Pallas's masked final tile (no padding copy, no garbage rows).
    B2 = 1100
    x2 = jax.random.normal(jax.random.PRNGKey(1), (B2, IMAGE_SIZE), jnp.float32)
    out2 = lr_forward(x2, weight.T, bias, tm=512)
    jax.block_until_ready(out2)
    ref2 = jax.nn.sigmoid(x2 @ weight.T + bias)
    assert out2.shape == (B2, 2)
    assert jnp.allclose(out2, ref2, atol=1e-5, rtol=1e-5)

    print("KERNEL_OK")
</pallas_src>

<mosaic_0001>
module attributes {stable_mosaic.version = 11 : i64} {
  func.func @lr_kernel(%arg0: i32, %arg1: memref<8x64xf32, #tpu.memory_space<vmem>>, %arg2: memref<64x2xf32, #tpu.memory_space<vmem>>, %arg3: memref<1x2xf32, #tpu.memory_space<vmem>>, %arg4: memref<8x2xf32, #tpu.memory_space<vmem>>) attributes {dimension_semantics = [#tpu.dimension_semantics<parallel>], iteration_bounds = array<i64: 1>, scalar_prefetch = 0 : i64, scratch_operands = 0 : i64, tpu.core_type = #tpu.core_type<tc>, window_params = [{transform_indices = @transform_0, window_bounds = array<i64: 8, 64>}, {pipeline_mode = #tpu.pipeline_mode<synchronous>, transform_indices = @transform_1, window_bounds = array<i64: 64, 2>}, {pipeline_mode = #tpu.pipeline_mode<synchronous>, transform_indices = @transform_2, window_bounds = array<i64: 1, 2>}, {transform_indices = @transform_3, window_bounds = array<i64: 8, 2>}]} {
    %c0 = arith.constant 0 : index
    %c0_0 = arith.constant 0 : index
    %0 = vector.load %arg1[%c0, %c0_0] : memref<8x64xf32, #tpu.memory_space<vmem>>, vector<8x64xf32>
    %c0_1 = arith.constant 0 : index
    %c0_2 = arith.constant 0 : index
    %1 = vector.load %arg2[%c0_1, %c0_2] : memref<64x2xf32, #tpu.memory_space<vmem>>, vector<64x2xf32>
    %cst = arith.constant dense<0.000000e+00> : vector<8x2xf32>
    %2 = tpu.matmul %0, %1, %cst {dimension_numbers = #tpu.dot_dimension_numbers<[1], [0], [0], [1], [0, 0, 1, 1], [], []>} : vector<8x64xf32>, vector<64x2xf32>, vector<8x2xf32> -> vector<8x2xf32>
    %c0_3 = arith.constant 0 : index
    %c0_4 = arith.constant 0 : index
    %3 = vector.load %arg3[%c0_3, %c0_4] : memref<1x2xf32, #tpu.memory_space<vmem>>, vector<1x2xf32>
    %4 = vector.broadcast %3 : vector<1x2xf32> to vector<8x2xf32>
    %5 = arith.addf %2, %4 : vector<8x2xf32>
    %6 = arith.negf %5 : vector<8x2xf32>
    %7 = math.exp %6 : vector<8x2xf32>
    %cst_5 = arith.constant 1.000000e+00 : f32
    %8 = vector.broadcast %cst_5 : f32 to vector<8x2xf32>
    %9 = arith.addf %8, %7 : vector<8x2xf32>
    %10 = arith.divf %8, %9 : vector<8x2xf32>
    %c0_6 = arith.constant 0 : index
    %c0_7 = arith.constant 0 : index
    %11 = vector.load %arg4[%c0_6, %c0_7] : memref<8x2xf32, #tpu.memory_space<vmem>>, vector<8x2xf32>
    tpu.vector_store %arg4[%c0_6, %c0_7], %10 {strides = array<i32>} : memref<8x2xf32, #tpu.memory_space<vmem>>, vector<8x2xf32>,
    return
  }
  func.func @transform_0(%arg0: i32) -> (i32, i32) {
    %c0_i32 = arith.constant 0 : i32
    %c0_i32_0 = arith.constant 0 : i32
    return %arg0, %c0_i32 : i32, i32
  }
  func.func @transform_1(%arg0: i32) -> (i32, i32) {
    %c0_i32 = arith.constant 0 : i32
    %c0_i32_0 = arith.constant 0 : i32
    %c0_i32_1 = arith.constant 0 : i32
    return %c0_i32, %c0_i32_0 : i32, i32
  }
  func.func @transform_2(%arg0: i32) -> (i32, i32) {
    %c0_i32 = arith.constant 0 : i32
    %c0_i32_0 = arith.constant 0 : i32
    %c0_i32_1 = arith.constant 0 : i32
    return %c0_i32, %c0_i32_0 : i32, i32
  }
  func.func @transform_3(%arg0: i32) -> (i32, i32) {
    %c0_i32 = arith.constant 0 : i32
    %c0_i32_0 = arith.constant 0 : i32
    return %arg0, %c0_i32 : i32, i32
  }
}

</mosaic_0001>

<bundles_post_ra>
// kernel: lr_forward.1
= control target key start
LH: loop header
LB: loop body
LE: loop exit
PB: predicated region body
PF: predicated region fallthrough
CT: control target
= control target key end

     0   :  { %v166_v0 = vmov 0.0|0.0   ;;  %vm167_vm0 = vmmov 0   ;;  %v168_v4 = vmov 0.0   ;;  %vm30_vm1 = vcmask 523264   ;;  %s222_s1 = inlined_call_operand.vmem [shape: f32[64,2], index: 1, kind: input, shape index: {}]   ;;  %s223_s0 = inlined_call_operand.vmem [shape: f32[8,64], index: 0, kind: input, shape index: {}]   ;;  %s224_s2 = inlined_call_operand.vmem [shape: f32[1,2], index: 2, kind: input, shape index: {}]   ;;  %s225_s3 = inlined_call_operand.vmem [shape: f32[8,2], index: 3, kind: output, shape index: {}]  }
   0x1   :  { %147 = vmatprep.subr.bf16.mxu0 %v166_v0  ;;  %v15_v1 = vld [vmem:[%s222_s1] sm:$0xff]  ;;  %v16_v2 = vld [vmem:[%s222_s1 + $0x8] sm:$0xff]  ;;  %v17_v3 = vld [vmem:[%s222_s1 + $0x10] sm:$0xff]  ;;  %144 = vmatprep.mubr.msk.f32.mxu0 %vm167_vm0, %v168_v4  ;;  %vm110_vm2 = vcmask 15360  }
   0x2   :  { %v148_v5 = vpack.c.bf16 %v16_v2, %v15_v1  ;;  %v18_v6 = vld [vmem:[%s222_s1 + $0x18] sm:$0xff]  ;;  %v19_v8 = vld [vmem:[%s222_s1 + $0x20] sm:$0xff]  ;;  %v20_v9 = vld [vmem:[%s222_s1 + $0x28] sm:$0xff] }
   0x3   :  { %v151_v7 = vpack.c.bf16 %v18_v6, %v17_v3  ;;  %v154_v10 = vpack.c.bf16 %v20_v9, %v19_v8  ;;  %v21_v11 = vld [vmem:[%s222_s1 + $0x30] sm:$0xff]  ;;  %v22_v12 = vld [vmem:[%s222_s1 + $0x38] sm:$0xff]  ;;  %v14_v14 = vld [vmem:[%s223_s0] sm:$0xff] }
   0x4   :  { %149 = vmatpush3.bf16.msra.mxu0 %v148_v5  ;;  %v157_v13 = vpack.c.bf16 %v22_v12, %v21_v11  ;;  %v116_v15 = vld [vmem:[%s224_s2] ss:$0 sm:$0xff] }
   0x5   :  { %150 = vmatprep.subr.bf16.mxu0 %v166_v0 }
   0x8   :  { %152 = vmatpush3.bf16.msra.mxu0 %v151_v7 }
   0x9   :  { %153 = vmatprep.subr.bf16.mxu0 %v166_v0 }
   0xc   :  { %155 = vmatpush3.bf16.msra.mxu0 %v154_v10 }
   0xd   :  { %156 = vmatprep.subr.bf16.mxu0 %v166_v0 }
  0x10   :  { %158 = vmatpush3.bf16.msra.mxu0 %v157_v13 }
  0x13   :  { %145 = vmatmul.mubr.msk.f32.vlgmr.msra.gmra.mrb[0].mxu0 %vm30_vm1, %v14_v14 }
  0xe6   :  { %v100_v16 = vpop.f32.mrb[0].mxu0 }
  0xe7   :  { %v101_v17 = vadd.f32 %v116_v15, %v100_v16  ;;  %v146_v18 = vpop.f32.mrb[1].mxu0 }
  0xe9   :  { %v118_v19 = vmul.f32 -1.442695, %v101_v17 }
  0xeb   :  { %162 = vpow2.f32 %v118_v19 }
  0xf5   :  { %v163_v20 = vpop.eup %162 }
  0xf6   :  { %v107_v21 = vadd.f32 1.0, %v163_v20 }
  0xf8   :  { %164 = vrcp.f32 %v107_v21 }
 0x102   :  { %v165_v22 = vpop.eup %164 }
 0x103   :  { %111 = vst.msk [vmem:[%s225_s3] sm:$0xff] %vm110_vm2, %v165_v22 }

</bundles_post_ra>
